<compile_context>
chip_gen: v7x
topology: tpu7x:2x2x1
jax: 0.10.0
libtpu: 0.0.40
codegen_flags: <defaults>
</compile_context>

<pallas_src>
import functools

import jax
import jax.numpy as jnp
from jax.experimental import pallas as pl
from jax.experimental.pallas import tpu as pltpu


def _round_up(x, m):
    return (x + m - 1) // m * m


def _bn_fold(bn, eps=1e-5):
    """Fold eval-mode BatchNorm (gamma, beta, running_mean, running_var) -> scale, shift."""
    gamma, beta, mean, var = bn
    s = gamma / jnp.sqrt(var + eps)
    return s, beta - mean * s


# ------------------------------------------------------------------------------------
# Kernel 1: fused linear  y = x @ W + b   (1x1 conv + folded BN / output projection)
# ------------------------------------------------------------------------------------
def _linear_kernel(x_ref, w_ref, b_ref, o_ref):
    x = x_ref[...].astype(w_ref.dtype)                       # activations -> bf16
    y = jnp.dot(x, w_ref[...], preferred_element_type=jnp.float32)   # MXU, f32 accum
    o_ref[...] = (y + b_ref[...]).astype(o_ref.dtype)        # bias add in f32 (VPU)


def pallas_linear(x2d, w, b, *, tile_m=256, matmul_dtype=jnp.bfloat16):
    """x2d: (M, K) f32, w: (K, N) f32, b: (N,) f32  ->  (M, N) f32."""
    M, K = x2d.shape
    Kw, N = w.shape
    assert Kw == K and b.shape == (N,)

    # Lane-dense padding: last dims to multiples of 128 (zero padding is exact and
    # sliced off below); rows padded to a multiple of the row tile.
    Kp = _round_up(K, 128)
    Np = _round_up(N, 128)
    tile = min(_round_up(tile_m, 8), _round_up(M, 8))
    Mp = _round_up(M, tile)

    xp = jnp.zeros((Mp, Kp), x2d.dtype).at[:M, :K].set(x2d)
    wp = jnp.zeros((Kp, Np), matmul_dtype).at[:K, :N].set(w.astype(matmul_dtype))
    bp = jnp.zeros((1, Np), jnp.float32).at[0, :N].set(b.astype(jnp.float32))

    vmem_need = 2 * (tile * Kp * 4 + Kp * Np * 2 + Np * 4 + tile * Np * 4)
    out = pl.pallas_call(
        _linear_kernel,
        out_shape=jax.ShapeDtypeStruct((Mp, Np), jnp.float32),
        grid_spec=pltpu.PrefetchScalarGridSpec(
            num_scalar_prefetch=0,
            grid=(Mp // tile,),
            in_specs=[
                pl.BlockSpec((tile, Kp), lambda i: (i, 0)),   # x row tile
                pl.BlockSpec((Kp, Np), lambda i: (0, 0)),     # W, resident
                pl.BlockSpec((1, Np), lambda i: (0, 0)),      # b, resident
            ],
            out_specs=pl.BlockSpec((tile, Np), lambda i: (i, 0)),
        ),
        compiler_params=pltpu.CompilerParams(
            dimension_semantics=("parallel",),
            vmem_limit_bytes=int(min(64 * 2**20, max(4 * 2**20, 2 * vmem_need))),
        ),
        cost_estimate=pl.CostEstimate(
            flops=int(2 * Mp * Kp * Np),
            transcendentals=0,
            bytes_accessed=int(Mp * Kp * 4 + Kp * Np * 2 + Np * 4 + Mp * Np * 4),
        ),
    )(xp, wp, bp)
    return out[:M, :N]


# ------------------------------------------------------------------------------------
# Kernel 2: depthwise 3x3 conv (stride 1, pad 1, no bias), NHWC
# ------------------------------------------------------------------------------------
def _dw3x3_kernel(x_ref, w_ref, o_ref):
    # x_ref: (1, L+2, W+2, C) zero-padded; w_ref: (3, 3, C); o_ref: (1, L, W, C)
    _, L, W, C = o_ref.shape
    w = w_ref[...]
    acc = jnp.zeros((L, W, C), jnp.float32)
    for di in range(3):                                      # unrolled 9-tap MAC (VPU)
        for dj in range(3):
            acc = acc + x_ref[0, di:di + L, dj:dj + W, :] * w[di:di + 1, dj:dj + 1, :]
    o_ref[0] = acc.astype(o_ref.dtype)


def pallas_dw3x3(x_nhwc, w_dw):
    """Depthwise 3x3 conv.  x: (B, L, W, C) f32, w: (3, 3, C) f32 -> (B, L, W, C) f32."""
    B, L, W, C = x_nhwc.shape
    xp = jnp.pad(x_nhwc, ((0, 0), (1, 1), (1, 1), (0, 0)))
    vmem_need = 2 * 4 * ((L + 2) * (W + 2) * C + L * W * C + 9 * C)
    return pl.pallas_call(
        _dw3x3_kernel,
        out_shape=jax.ShapeDtypeStruct((B, L, W, C), jnp.float32),
        grid_spec=pltpu.PrefetchScalarGridSpec(
            num_scalar_prefetch=0,
            grid=(B,),
            in_specs=[
                pl.BlockSpec((1, L + 2, W + 2, C), lambda b: (b, 0, 0, 0)),
                pl.BlockSpec((3, 3, C), lambda b: (0, 0, 0)),
            ],
            out_specs=pl.BlockSpec((1, L, W, C), lambda b: (b, 0, 0, 0)),
        ),
        compiler_params=pltpu.CompilerParams(
            dimension_semantics=("parallel",),
            vmem_limit_bytes=int(min(64 * 2**20, max(4 * 2**20, 2 * vmem_need))),
        ),
        cost_estimate=pl.CostEstimate(
            flops=int(2 * 9 * B * L * W * C),
            transcendentals=0,
            bytes_accessed=int(4 * (xp.size + B * L * W * C + w_dw.size)),
        ),
    )(xp, w_dw.astype(jnp.float32))


# ------------------------------------------------------------------------------------
# Kernel 3: multi-head attention (K == V), batched over (scale, batch, head) groups
# ------------------------------------------------------------------------------------
def _attention_kernel(q_ref, kv_ref, o_ref, *, scale):
    q = q_ref[0]                                             # (tq, dp)  bf16
    kv = kv_ref[0]                                           # (Nk, dp)  bf16
    s = jnp.einsum("qd,kd->qk", q, kv, preferred_element_type=jnp.float32) * scale
    m = jnp.max(s, axis=-1, keepdims=True)                   # XLU reduce
    e = jnp.exp(s - m)                                       # EUP
    p = e * pl.reciprocal(jnp.sum(e, axis=-1, keepdims=True), approx=True)
    o = jnp.dot(p.astype(kv.dtype), kv, preferred_element_type=jnp.float32)
    o_ref[0] = o.astype(o_ref.dtype)


def pallas_attention(q, kv, *, scale, tile_q=256, matmul_dtype=jnp.bfloat16):
    """q: (G, Nq, d), kv: (G, Nk, d) f32 (K == V).  Returns (G, Nq, d) f32."""
    G, Nq, d = q.shape
    Gk, Nk, dk = kv.shape
    assert Gk == G and dk == d

    dp = _round_up(d, 128)                                   # lane-dense head dim
    tq = min(_round_up(tile_q, 8), _round_up(Nq, 8))
    Nqp = _round_up(Nq, tq)

    qp = jnp.zeros((G, Nqp, dp), matmul_dtype).at[:, :Nq, :d].set(q.astype(matmul_dtype))
    kvp = jnp.zeros((G, Nk, dp), matmul_dtype).at[:, :, :d].set(kv.astype(matmul_dtype))

    vmem_need = 2 * (tq * dp * 2 + Nk * dp * 2 + tq * dp * 4) + 4 * tq * Nk
    out = pl.pallas_call(
        functools.partial(_attention_kernel, scale=scale),
        out_shape=jax.ShapeDtypeStruct((G, Nqp, dp), jnp.float32),
        grid_spec=pltpu.PrefetchScalarGridSpec(
            num_scalar_prefetch=0,
            grid=(G, Nqp // tq),
            in_specs=[
                pl.BlockSpec((1, tq, dp), lambda g, i: (g, i, 0)),
                pl.BlockSpec((1, Nk, dp), lambda g, i: (g, 0, 0)),
            ],
            out_specs=pl.BlockSpec((1, tq, dp), lambda g, i: (g, i, 0)),
        ),
        compiler_params=pltpu.CompilerParams(
            dimension_semantics=("parallel", "parallel"),
            vmem_limit_bytes=int(min(64 * 2**20, max(4 * 2**20, 2 * vmem_need))),
        ),
        cost_estimate=pl.CostEstimate(
            flops=int(4 * G * Nqp * Nk * dp),
            transcendentals=int(G * Nqp * Nk),
            bytes_accessed=int(2 * (qp.size + kvp.size) + 4 * G * Nqp * dp),
        ),
    )(qp, kvp)
    return out[:, :Nq, :d]


# ------------------------------------------------------------------------------------
# Full Res2Attention forward (Pallas path)
# ------------------------------------------------------------------------------------
def res2_attention_forward(x, params, *, img_size, heads, dim_head,
                           tile_m=256, matmul_dtype=jnp.bfloat16):
    B, n_seq, dim = x.shape
    L = W = img_size
    assert n_seq == L * W and img_size % 4 == 0
    assert dim % 8 == 0
    dq = dim // 4                         # channels per Res2 scale
    assert dq % heads == 0
    d = dq // heads                       # per-head width
    scale = float(dim_head) ** -0.5

    # 'b (l w) c -> b l w c'  (NHWC; equivalent to the module's NCHW convs)
    x_img = x.reshape(B, L, W, dim)

    # --- Res2Net.inconv: 1x1 conv (no bias) + eval BatchNorm, folded into W/b ---
    s_in, t_in = _bn_fold(params["inconv_bn"])
    identity = pallas_linear(x_img.reshape(B * L * W, dim),
                             params["inconv_w"] * s_in[None, :], t_in,
                             tile_m=tile_m, matmul_dtype=matmul_dtype)
    identity = identity.reshape(B, L, W, dim)

    # --- Res2 hierarchical branches with the shared x3conv (dw3x3 -> 1x1 -> BN) ---
    s_x3, t_x3 = _bn_fold(params["x3_bn"])
    w_pw = params["x3_pw_w"] * s_x3[None, :]
    xs = [identity[..., s * dq:(s + 1) * dq] for s in range(4)]
    ys = [xs[0]]
    for s in range(1, 4):
        inp = xs[s] if s == 1 else xs[s] + ys[s - 1]
        t = pallas_dw3x3(inp, params["x3_dw_w"])
        t = pallas_linear(t.reshape(B * L * W, dq), w_pw, t_x3,
                          tile_m=tile_m, matmul_dtype=matmul_dtype)
        ys.append(t.reshape(B, L, W, dq))

    # --- per-scale pooling: avg on first half channels, max on second half ---
    # TODO(synk): 4x4-window adaptive avg/max pooling is a tiny reduction kept in jnp.
    Lp = L // 4
    pools = []
    for s in range(4):
        r = ys[s].reshape(B, Lp, 4, Lp, 4, dq)
        pools.append(jnp.concatenate(
            [r[..., :dq // 2].mean(axis=(2, 4)), r[..., dq // 2:].max(axis=(2, 4))],
            axis=-1))                                        # (B, Lp, Lp, dq)

    # --- multi-head attention for all 4 scales in one batched Pallas call ---
    def to_heads(t):                                         # 'b l w (h d) -> b h (lw) d'
        b_, l_, w_, _ = t.shape
        return t.reshape(b_, l_ * w_, heads, d).transpose(0, 2, 1, 3)

    Nq = L * W
    Nk = Lp * Lp
    q = jnp.stack([to_heads(ys[s]) for s in range(4)], 0).reshape(4 * B * heads, Nq, d)
    kv = jnp.stack([to_heads(pools[s]) for s in range(4)], 0).reshape(4 * B * heads, Nk, d)
    att = pallas_attention(q, kv, scale=scale, tile_q=tile_m, matmul_dtype=matmul_dtype)

    # '(s b h) n d -> b n (s h d)'   (matches torch.cat of 'b h n d -> b n (h d)')
    att = att.reshape(4, B, heads, Nq, d).transpose(1, 3, 0, 2, 4).reshape(B, Nq, dim)

    # --- out_attention: Linear(dim, dim, bias=False); Dropout is identity in eval ---
    out = pallas_linear(att.reshape(B * Nq, dim), params["out_w"],
                        jnp.zeros((dim,), jnp.float32),
                        tile_m=tile_m, matmul_dtype=matmul_dtype)
    return out.reshape(B, Nq, dim)


# ------------------------------------------------------------------------------------
# Plain-JAX reference (same math, same bf16-matmul / f32-accumulate numerics)
# ------------------------------------------------------------------------------------
def reference_forward(x, params, *, img_size, heads, dim_head, matmul_dtype=jnp.bfloat16):
    B, n_seq, dim = x.shape
    L = W = img_size
    dq = dim // 4
    d = dq // heads
    scale = float(dim_head) ** -0.5

    def mm(a, w, b):
        return jnp.dot(a.astype(matmul_dtype), w.astype(matmul_dtype),
                       preferred_element_type=jnp.float32) + b

    def dw3x3(t, wdw):
        tp = jnp.pad(t, ((0, 0), (1, 1), (1, 1), (0, 0)))
        acc = jnp.zeros_like(t)
        for di in range(3):
            for dj in range(3):
                acc = acc + tp[:, di:di + L, dj:dj + W, :] * wdw[di, dj][None, None, None, :]
        return acc

    x_img = x.reshape(B, L, W, dim)
    s_in, t_in = _bn_fold(params["inconv_bn"])
    identity = mm(x_img.reshape(-1, dim), params["inconv_w"] * s_in[None, :],
                  t_in).reshape(B, L, W, dim)

    s_x3, t_x3 = _bn_fold(params["x3_bn"])
    w_pw = params["x3_pw_w"] * s_x3[None, :]
    xs = [identity[..., s * dq:(s + 1) * dq] for s in range(4)]
    ys = [xs[0]]
    for s in range(1, 4):
        inp = xs[s] if s == 1 else xs[s] + ys[s - 1]
        t = dw3x3(inp, params["x3_dw_w"])
        ys.append(mm(t.reshape(-1, dq), w_pw, t_x3).reshape(B, L, W, dq))

    Lp = L // 4
    pools = []
    for s in range(4):
        r = ys[s].reshape(B, Lp, 4, Lp, 4, dq)
        pools.append(jnp.concatenate(
            [r[..., :dq // 2].mean(axis=(2, 4)), r[..., dq // 2:].max(axis=(2, 4))],
            axis=-1))

    def to_heads(t):
        b_, l_, w_, _ = t.shape
        return t.reshape(b_, l_ * w_, heads, d).transpose(0, 2, 1, 3)

    outs = []
    for s in range(4):
        q = to_heads(ys[s]).astype(matmul_dtype)
        kv = to_heads(pools[s]).astype(matmul_dtype)
        att = jnp.einsum("bhid,bhjd->bhij", q, kv,
                         preferred_element_type=jnp.float32) * scale
        p = jax.nn.softmax(att, axis=-1)
        o = jnp.einsum("bhij,bhjd->bhid", p.astype(matmul_dtype), kv,
                       preferred_element_type=jnp.float32)
        outs.append(o.transpose(0, 2, 1, 3).reshape(B, L * W, heads * d))
    xcat = jnp.concatenate(outs, axis=-1)
    out = mm(xcat.reshape(-1, dim), params["out_w"], 0.0)
    return out.reshape(B, L * W, dim)


# ------------------------------------------------------------------------------------
# Deterministic parameter init (mimics PyTorch Conv/Linear uniform(-1/sqrt(fan_in), .))
# ------------------------------------------------------------------------------------
def _bn_init(key, c):
    k1, k2, k3, k4 = jax.random.split(key, 4)
    gamma = jax.random.uniform(k1, (c,), jnp.float32, 0.5, 1.5)
    beta = 0.1 * jax.random.normal(k2, (c,), jnp.float32)
    mean = 0.1 * jax.random.normal(k3, (c,), jnp.float32)
    var = jax.random.uniform(k4, (c,), jnp.float32, 0.5, 1.5)
    return (gamma, beta, mean, var)


def init_params(key, dim):
    dq = dim // 4
    ks = jax.random.split(key, 6)

    def unif(k, shape, fan_in):
        lim = fan_in ** -0.5
        return jax.random.uniform(k, shape, jnp.float32, -lim, lim)

    return {
        "inconv_w": unif(ks[0], (dim, dim), dim),        # Conv2d(dim,dim,1) as (Cin,Cout)
        "inconv_bn": _bn_init(ks[1], dim),
        "x3_dw_w": unif(ks[2], (3, 3, dq), 9),           # depthwise 3x3 as (kh,kw,C)
        "x3_pw_w": unif(ks[3], (dq, dq), dq),            # pointwise 1x1 as (Cin,Cout)
        "x3_bn": _bn_init(ks[4], dq),
        "out_w": unif(ks[5], (dim, dim), dim),           # Linear(dim,dim,no bias) (in,out)
    }


if __name__ == "__main__":
    batch, img_size, dim, heads = 2, 16, 64, 4
    dim_head = (dim // 4) // heads        # per-head width implied by the forward
    n_seq = img_size * img_size

    key = jax.random.PRNGKey(0)
    kx, kp = jax.random.split(key)
    x = jax.random.normal(kx, (batch, n_seq, dim), jnp.float32)
    params = init_params(kp, dim)

    out = res2_attention_forward(x, params, img_size=img_size, heads=heads,
                                 dim_head=dim_head)
    out = jax.block_until_ready(out)
    assert out.shape == (batch, n_seq, dim)

    ref = jax.block_until_ready(
        reference_forward(x, params, img_size=img_size, heads=heads, dim_head=dim_head))
    max_err = float(jnp.max(jnp.abs(out - ref)))
    assert jnp.allclose(out, ref, atol=2e-2, rtol=2e-2), f"max abs err {max_err}"

    print("KERNEL_OK")
</pallas_src>

<mosaic_0001>
module attributes {stable_mosaic.version = 11 : i64} {
  func.func @_linear_kernel(%arg0: i32, %arg1: memref<256x128xf32, #tpu.memory_space<vmem>>, %arg2: memref<128x128xbf16, #tpu.memory_space<vmem>>, %arg3: memref<1x128xf32, #tpu.memory_space<vmem>>, %arg4: memref<256x128xf32, #tpu.memory_space<vmem>>) attributes {dimension_semantics = [#tpu.dimension_semantics<parallel>], iteration_bounds = array<i64: 2>, scalar_prefetch = 0 : i64, scratch_operands = 0 : i64, tpu.core_type = #tpu.core_type<tc>, window_params = [{transform_indices = @transform_0, window_bounds = array<i64: 256, 128>}, {pipeline_mode = #tpu.pipeline_mode<synchronous>, transform_indices = @transform_1, window_bounds = array<i64: 128, 128>}, {pipeline_mode = #tpu.pipeline_mode<synchronous>, transform_indices = @transform_2, window_bounds = array<i64: 1, 128>}, {transform_indices = @transform_3, window_bounds = array<i64: 256, 128>}]} {
    %c0 = arith.constant 0 : index
    %c0_0 = arith.constant 0 : index
    %0 = vector.load %arg1[%c0, %c0_0] : memref<256x128xf32, #tpu.memory_space<vmem>>, vector<256x128xf32>
    %1 = arith.truncf %0 : vector<256x128xf32> to vector<256x128xbf16>
    %c0_1 = arith.constant 0 : index
    %c0_2 = arith.constant 0 : index
    %2 = vector.load %arg2[%c0_1, %c0_2] : memref<128x128xbf16, #tpu.memory_space<vmem>>, vector<128x128xbf16>
    %cst = arith.constant dense<0.000000e+00> : vector<256x128xf32>
    %3 = tpu.matmul %1, %2, %cst {dimension_numbers = #tpu.dot_dimension_numbers<[1], [0], [0], [1], [0, 0, 1, 1], [], []>} : vector<256x128xbf16>, vector<128x128xbf16>, vector<256x128xf32> -> vector<256x128xf32>
    %c0_3 = arith.constant 0 : index
    %c0_4 = arith.constant 0 : index
    %4 = vector.load %arg3[%c0_3, %c0_4] : memref<1x128xf32, #tpu.memory_space<vmem>>, vector<1x128xf32>
    %5 = vector.broadcast %4 : vector<1x128xf32> to vector<256x128xf32>
    %6 = arith.addf %3, %5 : vector<256x128xf32>
    %c0_5 = arith.constant 0 : index
    %c0_6 = arith.constant 0 : index
    %7 = vector.load %arg4[%c0_5, %c0_6] : memref<256x128xf32, #tpu.memory_space<vmem>>, vector<256x128xf32>
    tpu.vector_store %arg4[%c0_5, %c0_6], %6 {strides = array<i32>} : memref<256x128xf32, #tpu.memory_space<vmem>>, vector<256x128xf32>,
    return
  }
  func.func @transform_0(%arg0: i32) -> (i32, i32) {
    %c0_i32 = arith.constant 0 : i32
    %c0_i32_0 = arith.constant 0 : i32
    return %arg0, %c0_i32 : i32, i32
  }
  func.func @transform_1(%arg0: i32) -> (i32, i32) {
    %c0_i32 = arith.constant 0 : i32
    %c0_i32_0 = arith.constant 0 : i32
    %c0_i32_1 = arith.constant 0 : i32
    return %c0_i32, %c0_i32_0 : i32, i32
  }
  func.func @transform_2(%arg0: i32) -> (i32, i32) {
    %c0_i32 = arith.constant 0 : i32
    %c0_i32_0 = arith.constant 0 : i32
    %c0_i32_1 = arith.constant 0 : i32
    return %c0_i32, %c0_i32_0 : i32, i32
  }
  func.func @transform_3(%arg0: i32) -> (i32, i32) {
    %c0_i32 = arith.constant 0 : i32
    %c0_i32_0 = arith.constant 0 : i32
    return %arg0, %c0_i32 : i32, i32
  }
}

</mosaic_0001>

<bundles_post_ra>
// kernel: tpu_custom_call.1
= control target key start
LH: loop header
LB: loop body
LE: loop exit
PB: predicated region body
PF: predicated region fallthrough
CT: control target
= control target key end

     0   :  { %8 = vsyncpa [#allocation3], 0  ;;  %s1272_s0 = inlined_call_operand.hbm [shape: f32[512,128], index: 0, kind: input, shape index: {}]   ;;  %s1273_s1 = inlined_call_operand.hbm [shape: bf16[128,128], index: 1, kind: input, shape index: {}]   ;;  %s1274_s2 = inlined_call_operand.vmem [shape: f32[1,128], index: 2, kind: input, shape index: {}]   ;;  %s1275_s3 = inlined_call_operand.hbm [shape: f32[512,128], index: 3, kind: output, shape index: {}]  }
   0x1   :  { %10 = vsyncpa [#allocation3 + $0x1], 0 }
   0x2   :  { %11 = vsyncpa [#allocation6], 0 }
   0x3   :  { %12 = vsyncpa [#allocation4], 0 }
   0x4   :  { %14 = vsyncpa [#allocation4 + $0x1], 0  ;;  %s961_s12 = smov 0   ;;  %s963_s13 = smov 0  }
   0x5   :  { %s965_s14 = smov 0   ;;  %s967_s15 = smov 0  }
   0x6 LB: > { %s982_s16 = sadd.s32 4294967295, %s930_s15   ;;  %s616_s17 = sadd.s32 4294967294, %s930_s15   ;;  %s930_s15 = sphi %s967_s15, %s1295_s15   ;;  %s926_s14 = sphi %s965_s14, %s1294_s14   ;;  %s922_s13 = sphi %s963_s13, %s1293_s13   ;;  %s918_s12 = sphi %s961_s12, %s1292_s12  }
   0x7   : > { %p40_p0 = scmp.ne.s32.totalorder %s922_s13, %s918_s12  ;;  %p1276_p1 = scmp.eq.s32.totalorder %s982_s16, 0 }
   0x8   : > { %p112_p3 = scmp.eq.s32.totalorder %s616_s17, 1  ;;  %p617_p5 = scmp.ge.s32.totalorder %s930_s15, 1 }
   0x9   : > { %p991_p4 = por %p1276_p1, %p40_p0  ;;  %p119_p7 = scmp.lt.s32.totalorder %s930_s15, 3 }
   0xa   : > { %p996_p6 = por %p112_p3, %p40_p0  ;;  %s932_s21 = smov [#allocation5]  }
   0xb   : > { %s1279_s18 = scalar_select %p991_p4, 1, 0 }
   0xc   : > { %s1280_s19 = scalar_select %p996_p6, 1, 0 }
   0xd   : > { %p1001_p8 = pnand %p617_p5, %p119_p7  ;;  %s131_s22 = sshll.u32 %s932_s21, 4  ;;  %s1005_s22 = int_to_ptr.vmem [resolvable:$true] %s131_s22 }
   0xe   : > { %s1017_s24 = sadd.s32 1, %s930_s15   ;;  %s27_s25 = sadd.s32 1, %s926_s14 }
   0xf   : > { %s1281_s20 = scalar_select %p1001_p8, 1, 0 }
  0x10   : > { %p739_p9 = pneg %p1001_p8  ;;  %s24_s26 = ssub.s32 %s930_s15, %s1017_s24 }
  0x11   : > { %s802_s29 = scalar_lea.hbm %s1273_s1, 1024 }
  0x12   : > { %p1012_p11 = pnand %p739_p9, %p1276_p1  ;;  %p803_p12 = scmp.ne.s32.totalorder %s1273_s1, %s802_s29 }
  0x13   : > { %p809_p5 = scmp.lt.u32.totalorder %s802_s29, %s1273_s1 }
  0x14   : > { %p804_p13 = pneg %p1012_p11 }
  0x16   : > { %p805_p0 = pnand %p804_p13, %p803_p12 }
  0x18   : > { %p806_p3 = pneg %p805_p0 }
  0x1a   : > { %p811_p7 = pnand %p809_p5, %p806_p3 }
  0x1c   : > { %814 = shalt.err (!%p811_p7)
}
  0x1d   : > { %s815_s7 = scalar_lea.vmem %s1005_s22, 1024  ;;  %p823_p2 = scmp.lt.s32.totalorder %s1005_s22, %s1005_s22 }
  0x1e   : > { %p816_p9 = scmp.ne.s32.totalorder %s1005_s22, %s815_s7  ;;  %p824_p6 = scmp.lt.s32.totalorder %s815_s7, %s815_s7 }
  0x20   : > { %p818_p10 = pnand %p816_p9, %p804_p13  ;;  %p825_p4 = por %p824_p6, %p823_p2 }
  0x22   : > { %p819_p1 = pneg %p818_p10 }
  0x24   : > { %p826_p8 = pnand %p825_p4, %p819_p1 }
  0x26   : > { %829 = shalt.err (!%p826_p8)
}
  0x27   : > { %s933_s8 = smov 64   ;;  %s934_s9 = smov 4  }
  0x28   : > { %742 = dma.hbm_to_vmem [thread:$0]  (!%p1012_p11), %s1273_s1, 1024, %s1005_s22, [#allocation6], %s933_s8, %s933_s8, %s934_s9  }
  0x29   : > { %p25_p2 = scmp.eq.s32.totalorder %s24_s26, 0  ;;  %p34_p1 = scmp.ne.s32.totalorder %s926_s14, %s922_s13 }
  0x2a   : > { %p35_p4 = scmp.eq.s32.totalorder %s930_s15, 0  ;;  %p752_p6 = scmp.lt.s32.totalorder %s930_s15, 2 }
  0x2b   : > { %s1048_s17 = scalar_select %p25_p2, %s926_s14, %s27_s25  }
  0x2c   : > { %p36_p8 = por %p35_p4, %p34_p1  ;;  %p1283_p10 = scmp.eq.s32.totalorder %s982_s16, 1 }
  0x2d   : > { %s148_s27 = sand.u32 1, %s926_s14   ;;  %s641_s28 = sshll.u32 %s930_s15, 12 }
  0x2e   : > { %p1052_p12 = por %p1283_p10, %p34_p1  ;;  %s620_s29 = sshll.u32 %s148_s27, 8 }
  0x2f   : > { %s1061_s4 = scalar_lea.hbm %s1272_s0, %s641_s28  ;;  %s152_s22 = scalar_lea.vmem [#allocation2], %s620_s29 }
  0x30   : > { %s159_s25 = sshll.u32 %s152_s22, 4  ;;  %p1063_p11 = pnand %p752_p6, %p36_p8  ;;  %s1067_s25 = int_to_ptr.vmem [resolvable:$true] %s159_s25 }
  0x31   : > { %s1069_s5 = scalar_lea.sflag [#allocation3], %s148_s27  ;;  %s830_s6 = scalar_lea.hbm %s1061_s4, 4096 }
  0x32   : > { %p831_p13 = scmp.ne.s32.totalorder %s1061_s4, %s830_s6  ;;  %p832_p0 = pneg %p1063_p11 }
  0x33   : > { %s835_s9 = scalar_lea.hbm %s1272_s0, 8192  ;;  %p836_p7 = scmp.lt.u32.totalorder %s1061_s4, %s1272_s0 }
  0x34   : > { %p833_p3 = pnand %p832_p0, %p831_p13  ;;  %p837_p9 = scmp.lt.u32.totalorder %s835_s9, %s830_s6 }
  0x35   : > { %p839_p1 = scmp.lt.u32.totalorder %s830_s6, %s1061_s4 }
  0x36   : > { %p834_p5 = pneg %p833_p3  ;;  %p838_p2 = por %p837_p9, %p836_p7 }
  0x38   : > { %p840_p4 = por %p839_p1, %p838_p2 }
  0x3a   : > { %p841_p6 = pnand %p840_p4, %p834_p5 }
  0x3c   : > { %844 = shalt.err (!%p841_p6)
}
  0x3d   : > { %s845_s27 = scalar_lea.vmem %s1067_s25, 4096  ;;  %s935_s28 = smov [#allocation2]  }
  0x3e   : > { %p846_p8 = scmp.ne.s32.totalorder %s1067_s25, %s845_s27  ;;  %s850_s29 = sshll.u32 %s935_s28, 4  ;;  %s851_s29 = int_to_ptr.vmem [resolvable:$false] %s850_s29 }
  0x3f   : > { %s852_s23 = scalar_lea.vmem %s851_s29, 8192  ;;  %p853_p3 = scmp.lt.s32.totalorder %s1067_s25, %s851_s29 }
  0x40   : > { %p848_p10 = pnand %p846_p8, %p832_p0  ;;  %p854_p7 = scmp.lt.s32.totalorder %s852_s23, %s845_s27 }
  0x42   : > { %p849_p13 = pneg %p848_p10  ;;  %p855_p9 = por %p854_p7, %p853_p3 }
  0x44   : > { %p856_p2 = pnand %p855_p9, %p849_p13 }
  0x46   : > { %859 = shalt.err (!%p856_p2)
}
  0x47   : > { %s936_s30 = smov 128   ;;  %s937_s22 = smov 8  }
  0x48   : > { %746 = dma.hbm_to_vmem [thread:$0]  (!%p1063_p11), %s1061_s4, 4096, %s1067_s25, %s1069_s5, %s936_s30, %s936_s30, %s937_s22  }
  0x49   : > { %p1286_p0 = scmp.ne.s32.totalorder %s1281_s20, 0 }
  0x4a   : > { %s1100_s6 = sand.u32 (!%p1286_p0), 1, %s922_s13   ;;  %p1287_p5 = scmp.ne.s32.totalorder (!%p1286_p0), %s1279_s18, 0 }
  0x4b   : > { %171 = sbr.rel (%p1286_p0) target bundleno = 375 (0x177), region = 32  ;;  %s624_s7 = sshll.u32 (!%p1286_p0), %s1100_s6, 8 }
  0x4c   : > { %s174_s8 = scalar_lea.sflag (!%p1286_p0), [#allocation3], %s1100_s6  ;;  %s1106_s9 = scalar_lea.vmem (!%p1286_p0), [#allocation2], %s624_s7 }
  0x52   : > { %905 = dma.done.wait (%p1287_p5), %s174_s8, 4096  }
  0x53   : > { %907 = vsyncadd (%p1287_p5), %s174_s8, 4294963200  ;;  %p1288_p11 = scmp.eq.s32.totalorder %s982_s16, 0 }
  0x55   : > { %909 = dma.done.wait (%p1288_p11), [#allocation6], 1024   ;;  %p1289_p1 = pmov %p1288_p11 }
  0x56   : > { %v794_v0 = vld [vmem:[#allocation5] sm:$0xff]   ;;  %v795_v1 = vld [vmem:[#allocation5 + $0x8] sm:$0xff]   ;;  %v796_v2 = vld [vmem:[#allocation5 + $0x10] sm:$0xff]   ;;  %s1159_s4 = scalar_lea.vmem [#allocation7], %s624_s7  ;;  %s642_s25 = sshll.u32 %s982_s16, 12 }
  0x57   : > { %911 = vsyncadd (%p1289_p1), [#allocation6], 4294966272  ;;  %667 = vmatprep.subr.bf16.mxu0 %v794_v0  ;;  %715 = vmatprep.subr.bf16.mxu1 %v794_v0  ;;  %v797_v3 = vld [vmem:[#allocation5 + $0x18] sm:$0xff]   ;;  %v207_v4 = vld [vmem:[%s1106_s9] sm:$0xff]  ;;  %s533_s26 = sshll.u32 %s1159_s4, 4  ;;  %s1218_s10 = scalar_lea.hbm %s1275_s3, %s642_s25  ;;  %s1220_s26 = int_to_ptr.vmem [resolvable:$true] %s533_s26 }
  0x58   : > { %668 = vmatpush3.bf16.msra.mxu0 %v794_v0  ;;  %723 = vmatpush3.bf16.msra.mxu1 %v794_v0  ;;  %v208_v5 = vld [vmem:[%s1106_s9 + $0x8] sm:$0xff]  ;;  %v223_v6 = vld [vmem:[%s1106_s9 + $0x80] sm:$0xff]  ;;  %v800_v12 = vld [vmem:[#allocation5 + $0x30] sm:$0xff]   ;;  %s520_s11 = scalar_lea.sflag [#allocation4], %s1100_s6  ;;  %s860_s27 = scalar_lea.vmem %s1220_s26, 4096 }
  0x59   : > { %669 = vmatprep.subr.bf16.mxu0 %v795_v1  ;;  %716 = vmatprep.subr.bf16.mxu1 %v795_v1  ;;  %v239_v7 = vpack.c.bf16 %v208_v5, %v207_v4  ;;  %v224_v8 = vld [vmem:[%s1106_s9 + $0x88] sm:$0xff]  ;;  %v798_v10 = vld [vmem:[#allocation5 + $0x20] sm:$0xff]   ;;  %v801_v13 = vld [vmem:[#allocation5 + $0x38] sm:$0xff]   ;;  %p861_p4 = scmp.ne.s32.totalorder %s1220_s26, %s860_s27  ;;  %s938_s28 = smov [#allocation7]  }
  0x5a   : > { %v247_v9 = vpack.c.bf16 %v224_v8, %v223_v6  ;;  %v799_v11 = vld [vmem:[#allocation5 + $0x28] sm:$0xff]   ;;  %v209_v14 = vld [vmem:[%s1106_s9 + $0x10] sm:$0xff]  ;;  %v210_v15 = vld [vmem:[%s1106_s9 + $0x18] sm:$0xff]  ;;  %s864_s29 = sshll.u32 %s938_s28, 4  ;;  %s865_s29 = int_to_ptr.vmem [resolvable:$false] %s864_s29 }
  0x5b   : > { %683 = vmatprep.mubr.bf16.mxu0 %v239_v7  ;;  %v225_v16 = vld [vmem:[%s1106_s9 + $0x90] sm:$0xff]  ;;  %v226_v17 = vld [vmem:[%s1106_s9 + $0x98] sm:$0xff]  ;;  %v211_v18 = vld [vmem:[%s1106_s9 + $0x20] sm:$0xff]  ;;  %v240_v22 = vpack.c.bf16 %v210_v15, %v209_v14  ;;  %p862_p6 = pnand %p861_p4, %p1052_p12  ;;  %s866_s23 = scalar_lea.vmem %s865_s29, 8192 }
  0x5c   : > { %670 = vmatpush3.bf16.msra.mxu0 %v795_v1  ;;  %724 = vmatpush3.bf16.msra.mxu1 %v795_v1  ;;  %v212_v19 = vld [vmem:[%s1106_s9 + $0x28] sm:$0xff]  ;;  %v227_v20 = vld [vmem:[%s1106_s9 + $0xa0] sm:$0xff]  ;;  %v248_v23 = vpack.c.bf16 %v226_v17, %v225_v16  ;;  %v213_v26 = vld [vmem:[%s1106_s9 + $0x30] sm:$0xff]  ;;  %p867_p10 = scmp.lt.s32.totalorder %s1220_s26, %s865_s29  ;;  %p868_p13 = scmp.lt.s32.totalorder %s866_s23, %s860_s27 }
  0x5d   : > { %671 = vmatprep.subr.bf16.mxu0 %v796_v2  ;;  %717 = vmatprep.subr.bf16.mxu1 %v796_v2  ;;  %v228_v21 = vld [vmem:[%s1106_s9 + $0xa8] sm:$0xff]  ;;  %v241_v24 = vpack.c.bf16 %v212_v19, %v211_v18  ;;  %v214_v27 = vld [vmem:[%s1106_s9 + $0x38] sm:$0xff]  ;;  %v229_v28 = vld [vmem:[%s1106_s9 + $0xb0] sm:$0xff]  ;;  %p863_p8 = pneg %p862_p6 }
  0x5e   : > { %699 = vmatprep.mubr.bf16.mxu1 %v247_v9  ;;  %v249_v25 = vpack.c.bf16 %v228_v21, %v227_v20  ;;  %v230_v29 = vld [vmem:[%s1106_s9 + $0xb8] sm:$0xff]  ;;  %v215_v30 = vld [vmem:[%s1106_s9 + $0x40] sm:$0xff]  ;;  %v216_v31 = vld [vmem:[%s1106_s9 + $0x48] sm:$0xff]  ;;  %v242_v34 = vpack.c.bf16 %v214_v27, %v213_v26  ;;  %p869_p3 = por %p868_p13, %p867_p10 }
  0x5f   : > { %v231_v32 = vld [vmem:[%s1106_s9 + $0xc0] sm:$0xff]  ;;  %v232_v33 = vld [vmem:[%s1106_s9 + $0xc8] sm:$0xff]  ;;  %v250_v35 = vpack.c.bf16 %v230_v29, %v229_v28  ;;  %v243_v36 = vpack.c.bf16 %v216_v31, %v215_v30  ;;  %v217_v38 = vld [vmem:[%s1106_s9 + $0x50] sm:$0xff] }
  0x60   : > { %672 = vmatpush3.bf16.msra.mxu0 %v796_v2  ;;  %725 = vmatpush3.bf16.msra.mxu1 %v796_v2  ;;  %v251_v37 = vpack.c.bf16 %v232_v33, %v231_v32  ;;  %v218_v39 = vld [vmem:[%s1106_s9 + $0x58] sm:$0xff]  ;;  %v233_v40 = vld [vmem:[%s1106_s9 + $0xd0] sm:$0xff]  ;;  %v219_v42 = vld [vmem:[%s1106_s9 + $0x60] sm:$0xff]  ;;  %p870_p7 = pnand %p869_p3, %p863_p8 }
  0x61   : > { %673 = vmatprep.subr.bf16.mxu0 %v797_v3  ;;  %718 = vmatprep.subr.bf16.mxu1 %v797_v3  ;;  %v234_v41 = vld [vmem:[%s1106_s9 + $0xd8] sm:$0xff]  ;;  %v220_v43 = vld [vmem:[%s1106_s9 + $0x68] sm:$0xff]  ;;  %v235_v44 = vld [vmem:[%s1106_s9 + $0xe0] sm:$0xff]  ;;  %v244_v46 = vpack.c.bf16 %v218_v39, %v217_v38 }
  0x62   : > { %v236_v45 = vld [vmem:[%s1106_s9 + $0xe8] sm:$0xff]  ;;  %v252_v47 = vpack.c.bf16 %v234_v41, %v233_v40  ;;  %v245_v48 = vpack.c.bf16 %v220_v43, %v219_v42  ;;  %v221_v50 = vld [vmem:[%s1106_s9 + $0x70] sm:$0xff]  ;;  %v222_v51 = vld [vmem:[%s1106_s9 + $0x78] sm:$0xff] }
  0x63   : > { %v253_v49 = vpack.c.bf16 %v236_v45, %v235_v44  ;;  %v237_v52 = vld [vmem:[%s1106_s9 + $0xf0] sm:$0xff]  ;;  %v238_v53 = vld [vmem:[%s1106_s9 + $0xf8] sm:$0xff]  ;;  %v246_v54 = vpack.c.bf16 %v222_v51, %v221_v50  ;;  %v1151_v56 = vld [vmem:[%s1274_s2] ss:$0 sm:$0xff] }
  0x64   : > { %674 = vmatpush3.bf16.msra.mxu0 %v797_v3  ;;  %726 = vmatpush3.bf16.msra.mxu1 %v797_v3  ;;  %v254_v55 = vpack.c.bf16 %v238_v53, %v237_v52 }
  0x65   : > { %675 = vmatprep.subr.bf16.mxu0 %v798_v10  ;;  %719 = vmatprep.subr.bf16.mxu1 %v798_v10 }
  0x68   : > { %676 = vmatpush3.bf16.msra.mxu0 %v798_v10  ;;  %727 = vmatpush3.bf16.msra.mxu1 %v798_v10 }
  0x69   : > { %677 = vmatprep.subr.bf16.mxu0 %v799_v11  ;;  %720 = vmatprep.subr.bf16.mxu1 %v799_v11 }
  0x6c   : > { %678 = vmatpush3.bf16.msra.mxu0 %v799_v11  ;;  %728 = vmatpush3.bf16.msra.mxu1 %v799_v11 }
  0x6d   : > { %679 = vmatprep.subr.bf16.mxu0 %v800_v12  ;;  %721 = vmatprep.subr.bf16.mxu1 %v800_v12 }
  0x70   : > { %680 = vmatpush3.bf16.msra.mxu0 %v800_v12  ;;  %729 = vmatpush3.bf16.msra.mxu1 %v800_v12 }
  0x71   : > { %681 = vmatprep.subr.bf16.mxu0 %v801_v13  ;;  %722 = vmatprep.subr.bf16.mxu1 %v801_v13 }
  0x74   : > { %682 = vmatpush3.bf16.msra.mxu0 %v801_v13  ;;  %730 = vmatpush3.bf16.msra.mxu1 %v801_v13 }
  0x77   : > { %684 = vmatmul.mubr.bf16.vlgmr.msra.gmra.mrb[0].mxu0 %v240_v22  ;;  %700 = vmatmul.mubr.bf16.vlgmr.msra.gmra.mrb[0].mxu1 %v248_v23 }
  0x78   : > { %687 = vmatprep.mubr.bf16.mxu0 %v241_v24  ;;  %703 = vmatprep.mubr.bf16.mxu1 %v249_v25 }
  0x7f   : > { %688 = vmatmul.mubr.bf16.gmra.mrb[4].mxu0 %v242_v34  ;;  %704 = vmatmul.mubr.bf16.gmra.mrb[4].mxu1 %v250_v35 }
  0x80   : > { %691 = vmatprep.mubr.bf16.mxu0 %v243_v36  ;;  %707 = vmatprep.mubr.bf16.mxu1 %v251_v37 }
  0x87   : > { %692 = vmatmul.mubr.bf16.gmra.mrb[8].mxu0 %v244_v46  ;;  %708 = vmatmul.mubr.bf16.gmra.mrb[8].mxu1 %v252_v47 }
  0x88   : > { %695 = vmatprep.mubr.bf16.mxu0 %v245_v48  ;;  %711 = vmatprep.mubr.bf16.mxu1 %v253_v49 }
  0x8f   : > { %696 = vmatmul.mubr.bf16.gmra.mrb[12].mxu0 %v246_v54  ;;  %712 = vmatmul.mubr.bf16.gmra.mrb[12].mxu1 %v254_v55 }
 0x14a   : > { %v685_v57 = vpop.f32.mrb[0].mxu0  ;;  %v701_v58 = vpop.f32.mrb[0].mxu1 }
 0x14b   : > { %v369_v59 = vadd.f32 %v685_v57, %v1151_v56  ;;  %v433_v60 = vadd.f32 %v701_v58, %v1151_v56  ;;  %v360_v61 = vpop.f32.mrb[1].mxu0  ;;  %v424_v62 = vpop.f32.mrb[1].mxu1 }
 0x14c   : > { %v361_v63 = vadd.f32 %v1151_v56, %v360_v61  ;;  %v425_v0 = vadd.f32 %v1151_v56, %v424_v62  ;;  %v686_v1 = vpop.f32.mrb[2].mxu0  ;;  %v702_v2 = vpop.f32.mrb[2].mxu1 }
 0x14d   : > { %489 = vst [vmem:[%s1159_s4 + $0x10] sm:$0xff] %v369_v59  ;;  %505 = vst [vmem:[%s1159_s4 + $0x90] sm:$0xff] %v433_v60  ;;  %v372_v3 = vadd.f32 %v686_v1, %v1151_v56  ;;  %v436_v4 = vadd.f32 %v702_v2, %v1151_v56  ;;  %v363_v5 = vpop.f32.mrb[3].mxu0  ;;  %v427_v6 = vpop.f32.mrb[3].mxu1 }
 0x14e   : > { %487 = vst [vmem:[%s1159_s4] sm:$0xff] %v361_v63  ;;  %503 = vst [vmem:[%s1159_s4 + $0x80] sm:$0xff] %v425_v0  ;;  %v364_v7 = vadd.f32 %v1151_v56, %v363_v5  ;;  %v428_v8 = vadd.f32 %v1151_v56, %v427_v6 }
 0x14f   : > { %490 = vst [vmem:[%s1159_s4 + $0x18] sm:$0xff] %v372_v3  ;;  %506 = vst [vmem:[%s1159_s4 + $0x98] sm:$0xff] %v436_v4 }
 0x150   : > { %488 = vst [vmem:[%s1159_s4 + $0x8] sm:$0xff] %v364_v7  ;;  %504 = vst [vmem:[%s1159_s4 + $0x88] sm:$0xff] %v428_v8 }
 0x152   : > { %v689_v9 = vpop.f32.mrb[4].mxu0  ;;  %v705_v10 = vpop.f32.mrb[4].mxu1 }
 0x153   : > { %v385_v11 = vadd.f32 %v689_v9, %v1151_v56  ;;  %v449_v12 = vadd.f32 %v705_v10, %v1151_v56  ;;  %v376_v13 = vpop.f32.mrb[5].mxu0  ;;  %v440_v14 = vpop.f32.mrb[5].mxu1 }
 0x154   : > { %v377_v15 = vadd.f32 %v1151_v56, %v376_v13  ;;  %v441_v16 = vadd.f32 %v1151_v56, %v440_v14  ;;  %v690_v17 = vpop.f32.mrb[6].mxu0  ;;  %v706_v18 = vpop.f32.mrb[6].mxu1 }
 0x155   : > { %493 = vst [vmem:[%s1159_s4 + $0x30] sm:$0xff] %v385_v11  ;;  %509 = vst [vmem:[%s1159_s4 + $0xb0] sm:$0xff] %v449_v12  ;;  %v388_v19 = vadd.f32 %v690_v17, %v1151_v56  ;;  %v452_v20 = vadd.f32 %v706_v18, %v1151_v56  ;;  %v379_v21 = vpop.f32.mrb[7].mxu0  ;;  %v443_v22 = vpop.f32.mrb[7].mxu1 }
 0x156   : > { %491 = vst [vmem:[%s1159_s4 + $0x20] sm:$0xff] %v377_v15  ;;  %507 = vst [vmem:[%s1159_s4 + $0xa0] sm:$0xff] %v441_v16  ;;  %v380_v23 = vadd.f32 %v1151_v56, %v379_v21  ;;  %v444_v24 = vadd.f32 %v1151_v56, %v443_v22 }
 0x157   : > { %494 = vst [vmem:[%s1159_s4 + $0x38] sm:$0xff] %v388_v19  ;;  %510 = vst [vmem:[%s1159_s4 + $0xb8] sm:$0xff] %v452_v20 }
 0x158   : > { %492 = vst [vmem:[%s1159_s4 + $0x28] sm:$0xff] %v380_v23  ;;  %508 = vst [vmem:[%s1159_s4 + $0xa8] sm:$0xff] %v444_v24 }
 0x15a   : > { %v693_v25 = vpop.f32.mrb[8].mxu0  ;;  %v709_v26 = vpop.f32.mrb[8].mxu1 }
 0x15b   : > { %v401_v27 = vadd.f32 %v693_v25, %v1151_v56  ;;  %v465_v28 = vadd.f32 %v709_v26, %v1151_v56  ;;  %v392_v29 = vpop.f32.mrb[9].mxu0  ;;  %v456_v30 = vpop.f32.mrb[9].mxu1 }
 0x15c   : > { %v393_v31 = vadd.f32 %v1151_v56, %v392_v29  ;;  %v457_v32 = vadd.f32 %v1151_v56, %v456_v30  ;;  %v694_v33 = vpop.f32.mrb[10].mxu0  ;;  %v710_v34 = vpop.f32.mrb[10].mxu1 }
 0x15d   : > { %497 = vst [vmem:[%s1159_s4 + $0x50] sm:$0xff] %v401_v27  ;;  %513 = vst [vmem:[%s1159_s4 + $0xd0] sm:$0xff] %v465_v28  ;;  %v404_v35 = vadd.f32 %v694_v33, %v1151_v56  ;;  %v468_v36 = vadd.f32 %v710_v34, %v1151_v56  ;;  %v395_v37 = vpop.f32.mrb[11].mxu0  ;;  %v459_v38 = vpop.f32.mrb[11].mxu1 }
 0x15e   : > { %495 = vst [vmem:[%s1159_s4 + $0x40] sm:$0xff] %v393_v31  ;;  %511 = vst [vmem:[%s1159_s4 + $0xc0] sm:$0xff] %v457_v32  ;;  %v396_v39 = vadd.f32 %v1151_v56, %v395_v37  ;;  %v460_v40 = vadd.f32 %v1151_v56, %v459_v38 }
 0x15f   : > { %498 = vst [vmem:[%s1159_s4 + $0x58] sm:$0xff] %v404_v35  ;;  %514 = vst [vmem:[%s1159_s4 + $0xd8] sm:$0xff] %v468_v36 }
 0x160   : > { %496 = vst [vmem:[%s1159_s4 + $0x48] sm:$0xff] %v396_v39  ;;  %512 = vst [vmem:[%s1159_s4 + $0xc8] sm:$0xff] %v460_v40 }
 0x162   : > { %v697_v41 = vpop.f32.mrb[12].mxu0  ;;  %v713_v42 = vpop.f32.mrb[12].mxu1 }
 0x163   : > { %v417_v43 = vadd.f32 %v697_v41, %v1151_v56  ;;  %v481_v44 = vadd.f32 %v713_v42, %v1151_v56  ;;  %v408_v45 = vpop.f32.mrb[13].mxu0  ;;  %v472_v46 = vpop.f32.mrb[13].mxu1 }
 0x164   : > { %v409_v47 = vadd.f32 %v1151_v56, %v408_v45  ;;  %v473_v48 = vadd.f32 %v1151_v56, %v472_v46  ;;  %v698_v49 = vpop.f32.mrb[14].mxu0  ;;  %v714_v50 = vpop.f32.mrb[14].mxu1 }
 0x165   : > { %501 = vst [vmem:[%s1159_s4 + $0x70] sm:$0xff] %v417_v43  ;;  %517 = vst [vmem:[%s1159_s4 + $0xf0] sm:$0xff] %v481_v44  ;;  %v420_v51 = vadd.f32 %v698_v49, %v1151_v56  ;;  %v484_v52 = vadd.f32 %v714_v50, %v1151_v56  ;;  %v411_v53 = vpop.f32.mrb[15].mxu0  ;;  %v475_v54 = vpop.f32.mrb[15].mxu1 }
 0x166   : > { %499 = vst [vmem:[%s1159_s4 + $0x60] sm:$0xff] %v409_v47  ;;  %515 = vst [vmem:[%s1159_s4 + $0xe0] sm:$0xff] %v473_v48  ;;  %v412_v55 = vadd.f32 %v1151_v56, %v411_v53  ;;  %v476_v57 = vadd.f32 %v1151_v56, %v475_v54 }
 0x167   : > { %502 = vst [vmem:[%s1159_s4 + $0x78] sm:$0xff] %v420_v51  ;;  %518 = vst [vmem:[%s1159_s4 + $0xf8] sm:$0xff] %v484_v52 }
 0x168   : > { %500 = vst [vmem:[%s1159_s4 + $0x68] sm:$0xff] %v412_v55  ;;  %516 = vst [vmem:[%s1159_s4 + $0xe8] sm:$0xff] %v476_v57 }
 0x169   : > { %873 = shalt.err (!%p870_p7)
}
 0x16a   : > { %s874_s30 = scalar_lea.hbm %s1218_s10, 4096  ;;  %s878_s8 = scalar_lea.hbm %s1275_s3, 8192 }
 0x16b   : > { %p875_p9 = scmp.ne.s32.totalorder %s1218_s10, %s874_s30  ;;  %p879_p5 = scmp.lt.u32.totalorder %s1218_s10, %s1275_s3 }
 0x16c   : > { %p880_p11 = scmp.lt.u32.totalorder %s878_s8, %s874_s30  ;;  %p882_p4 = scmp.lt.u32.totalorder %s874_s30, %s1218_s10 }
 0x16d   : > { %p876_p2 = pnand %p875_p9, %p1052_p12 }
 0x16e   : > { %p881_p1 = por %p880_p11, %p879_p5 }
 0x16f   : > { %p877_p0 = pneg %p876_p2 }
 0x170   : > { %p883_p6 = por %p882_p4, %p881_p1 }
 0x172   : > { %p884_p8 = pnand %p883_p6, %p877_p0 }
 0x174   : > { %887 = shalt.err (!%p884_p8)
}
 0x175   : > { %s939_s20 = smov 128   ;;  %s940_s4 = smov 8  }
 0x176   : > { %737 = dma.vmem_to_hbm [thread:$0]  (%p1052_p12), %s1220_s26, 4096, %s1218_s10, %s520_s11, %s939_s20, %s939_s20, %s940_s4  }
 0x177 PF: > { %s548_s25 = sand.u32 1, %s918_s12   ;;  %p1290_p10 = scmp.ne.s32.totalorder %s1280_s19, 0 }
 0x178   : > { %p1291_p13 = scmp.ge.s32.totalorder %s930_s15, 2  ;;  %s549_s16 = scalar_lea.sflag [#allocation4], %s548_s25 }
 0x17a   : > { %p748_p3 = pnand %p1291_p13, %p1290_p10 }
 0x17c   : > { %913 = dma.done.wait (!%p748_p3), %s549_s16, 4096  }
 0x17d   : > { %915 = vsyncadd (!%p748_p3), %s549_s16, 4294963200  ;;  %p17_p7 = scmp.ge.s32.totalorder %s1017_s24, 4   ;;  %s1292_s12 = smov %s922_s13 }
 0x17e   : > { %s1293_s13 = smov %s926_s14  ;;  %s1294_s14 = smov %s1048_s17 }
 0x17f   : > { %s1295_s15 = smov %s1017_s24  ;;  %19 = sbr.rel (!%p17_p7) target bundleno = 6 (0x6), region = 81 }
 0x186   :  { %554 = vsyncpa [#allocation3], 1 }
 0x187   :  { %556 = vsyncpa [#allocation3 + $0x1], 1 }
 0x188   :  { %557 = vsyncpa [#allocation6], 1 }
 0x189   :  { %558 = vsyncpa [#allocation4], 1 }
 0x18a   :  { %560 = vsyncpa [#allocation4 + $0x1], 1 }

</bundles_post_ra>
